<compile_context>
chip_gen: v7x
topology: tpu7x:2x2x1
jax: 0.10.0
libtpu: 0.0.40
codegen_flags: <defaults>
</compile_context>

<pallas_src>
import functools
from typing import NamedTuple

import jax
import jax.numpy as jnp
from jax.experimental import pallas as pl
from jax.experimental.pallas import tpu as pltpu


def _round_up(x: int, m: int) -> int:
    return ((x + m - 1) // m) * m


def _cdiv(a: int, b: int) -> int:
    return -(-a // b)


def _largest_aligned_divisor(dim: int, cap: int, align: int = 128) -> int:
    """Largest multiple of `align` that divides `dim` and is <= cap (dim % align == 0)."""
    best = align
    cand = align
    top = min(dim, cap)
    while cand <= top:
        if dim % cand == 0:
            best = cand
        cand += align
    return best


# ---------------------------------------------------------------------------
# Kernels
# ---------------------------------------------------------------------------
def _fc_kernel_single(x_ref, w_ref, b_ref, o_ref, *, relu: bool, mxu_dtype):
    """Single K-step: out = relu(x @ W + b) written directly (no accumulator scratch)."""
    x = x_ref[...]
    w = w_ref[...]
    if mxu_dtype is not None:                      # bf16 MXU path, f32 accumulation
        x = x.astype(mxu_dtype)
        w = w.astype(mxu_dtype)
    out = jnp.dot(x, w, preferred_element_type=jnp.float32) + b_ref[...]
    if relu:
        out = jnp.maximum(out, 0.0)
    o_ref[...] = out.astype(o_ref.dtype)


def _fc_kernel_acc(x_ref, w_ref, b_ref, o_ref, acc_ref, *, relu: bool, mxu_dtype):
    """Multi K-step: f32 VMEM accumulator, epilogue (bias/ReLU/cast) only at k == last."""
    k = pl.program_id(2)

    @pl.when(k == 0)
    def _():
        acc_ref[...] = jnp.zeros_like(acc_ref)

    x = x_ref[...]
    w = w_ref[...]
    if mxu_dtype is not None:
        x = x.astype(mxu_dtype)
        w = w.astype(mxu_dtype)
    acc_ref[...] += jnp.dot(x, w, preferred_element_type=jnp.float32)

    @pl.when(k == pl.num_programs(2) - 1)
    def _():
        out = acc_ref[...] + b_ref[...]
        if relu:
            out = jnp.maximum(out, 0.0)
        o_ref[...] = out.astype(o_ref.dtype)


# ---------------------------------------------------------------------------
# Parameter preparation (done once, off the per-call path)
# ---------------------------------------------------------------------------
class FCParams(NamedTuple):
    w_t: jax.Array   # [Kp, Np]  weight transposed to [F_in, F_out], lane-padded
    b: jax.Array     # [1, Np]   bias, lane-padded
    f_in: int
    f_out: int
    kp: int
    np_: int
    tk: int
    tn: int


def prepare_fc_params(weight, bias, *, tk_max: int = 1024, tn_max: int = 512) -> FCParams:
    """Transpose + pad the nn.Linear weight once (amortized across forward calls).

    weight: [F_out, F_in] (PyTorch layout); bias: [F_out].
    K/N tiles are chosen as 128-multiple divisors of the padded dims so no further
    per-call weight padding is ever needed.
    """
    f_out, f_in = weight.shape
    kp = _round_up(f_in, 128)
    np_ = _round_up(f_out, 128)

    w_t = weight.T                                  # [F_in, F_out]
    if (kp, np_) != (f_in, f_out):
        w_t = jnp.pad(w_t, ((0, kp - f_in), (0, np_ - f_out)))
    b = bias if np_ == f_out else jnp.pad(bias, (0, np_ - f_out))
    b = b.reshape(1, np_)

    tk = _largest_aligned_divisor(kp, tk_max)
    tn = _largest_aligned_divisor(np_, tn_max)
    return FCParams(w_t=w_t, b=b, f_in=f_in, f_out=f_out, kp=kp, np_=np_, tk=tk, tn=tn)


# ---------------------------------------------------------------------------
# Forward
# ---------------------------------------------------------------------------
def fc_forward(x, params: FCParams, *, relu: bool = True, use_bf16_mxu: bool = False,
               tm_max: int = 512, weight_buffer_count: int = 2):
    """Pallas equivalent of FC.forward in eval mode: relu(x @ W.T + b).

    x: [B, F_in]; params from prepare_fc_params(); returns [B, F_out].
    """
    B, f_in = x.shape
    assert f_in == params.f_in, "x feature dim must match prepared weight"

    itemsize = jnp.dtype(x.dtype).itemsize
    # Sub-32-bit dtypes pack more rows per sublane tile: 8 (f32), 16 (bf16), 32 (int8).
    m_align = max(8, 32 // itemsize)

    # Balanced M tiling: split into ceil(M/tm_max) nearly equal, aligned tiles.
    mp0 = _round_up(B, m_align)
    n_m = _cdiv(mp0, tm_max)
    tm = _round_up(_cdiv(mp0, n_m), m_align)
    mp = _round_up(mp0, tm)

    kp, np_, tk = params.kp, params.np_, params.tk
    tn = params.tn

    # Pad x only when actually needed (weight/bias are already prepared & padded).
    if (mp, kp) != (B, f_in):
        x_in = jnp.pad(x, ((0, mp - B), (0, kp - f_in)))
    else:
        x_in = x

    msteps = mp // tm
    nsteps = np_ // tn
    # v7x has 2 TensorCores: guarantee >=2 blocks on a "parallel" axis for small-batch
    # calls.  Any 128-multiple divisor of Np keeps the prepared padding valid.
    if msteps == 1 and nsteps == 1 and np_ >= 256:
        tn = _largest_aligned_divisor(np_, np_ // 2)
        nsteps = np_ // tn
    ksteps = kp // tk

    out_dtype = x.dtype
    mxu_dtype = (jnp.bfloat16
                 if (use_bf16_mxu and jnp.dtype(x.dtype) == jnp.dtype(jnp.float32))
                 else None)

    # Weight stream: optionally deepen buffering for the short-step small-M regime.
    w_index_map = lambda i, j, k: (k, j)
    w_bufs = 2
    w_spec = pl.BlockSpec((tk, tn), w_index_map)
    if weight_buffer_count > 2 and msteps == 1 and hasattr(pl, "Buffered"):
        try:
            w_spec = pl.BlockSpec((tk, tn), w_index_map,
                                  pipeline_mode=pl.Buffered(weight_buffer_count))
            w_bufs = weight_buffer_count
        except Exception:
            w_spec = pl.BlockSpec((tk, tn), w_index_map)

    in_specs = [
        pl.BlockSpec((tm, tk), lambda i, j, k: (i, k)),   # x tile
        w_spec,                                           # weight tile [F_in, F_out]
        pl.BlockSpec((1, tn), lambda i, j, k: (0, j)),    # bias tile
    ]
    out_specs = pl.BlockSpec((tm, tn), lambda i, j, k: (i, j))

    if ksteps == 1:
        kernel = functools.partial(_fc_kernel_single, relu=relu, mxu_dtype=mxu_dtype)
        scratch = []
        acc_bytes = 0
    else:
        kernel = functools.partial(_fc_kernel_acc, relu=relu, mxu_dtype=mxu_dtype)
        scratch = [pltpu.VMEM((tm, tn), jnp.float32)]
        acc_bytes = tm * tn * 4

    # VMEM budget: double-buffered in/out tiles + weight buffers + accumulator, with
    # headroom.  Raises v5e's 16 MiB scoped default when big tiles need it; capped at
    # 64 MiB so it also fits v7x physical VMEM.
    w_item = jnp.dtype(params.w_t.dtype).itemsize
    b_item = jnp.dtype(params.b.dtype).itemsize
    out_item = jnp.dtype(out_dtype).itemsize
    vmem_bytes = (2 * tm * tk * itemsize
                  + w_bufs * tk * tn * w_item
                  + 2 * tn * b_item
                  + 2 * tm * tn * out_item
                  + acc_bytes)
    vmem_limit = min(max(int(vmem_bytes * 1.25) + (2 << 20), 16 << 20), 64 << 20)

    cost = pl.CostEstimate(
        flops=2 * mp * np_ * kp,
        transcendentals=0,
        bytes_accessed=(x_in.size * itemsize * nsteps
                        + params.w_t.size * w_item * msteps
                        + params.b.size * b_item
                        + mp * np_ * out_item),
    )

    out_padded = pl.pallas_call(
        kernel,
        out_shape=jax.ShapeDtypeStruct((mp, np_), out_dtype),
        grid_spec=pltpu.PrefetchScalarGridSpec(
            num_scalar_prefetch=0,
            grid=(msteps, nsteps, ksteps),
            in_specs=in_specs,
            out_specs=out_specs,
            scratch_shapes=scratch,
        ),
        compiler_params=pltpu.CompilerParams(
            dimension_semantics=("parallel", "parallel", "arbitrary"),
            vmem_limit_bytes=vmem_limit,
        ),
        cost_estimate=cost,
    )(x_in, params.w_t, params.b)

    # TODO(synk): nn.Dropout(p=0.5) only runs when module.training is True; the inference
    # forward pass implemented here intentionally omits it.
    if (mp, np_) != (B, params.f_out):
        return out_padded[:B, :params.f_out]
    return out_padded


def fc_apply(x, weight, bias, *, relu: bool = True, **kwargs):
    """One-shot convenience wrapper. For repeated calls, hoist prepare_fc_params()."""
    return fc_forward(x, prepare_fc_params(weight, bias), relu=relu, **kwargs)


# ---------------------------------------------------------------------------
# Self-test
# ---------------------------------------------------------------------------
if __name__ == "__main__":
    key = jax.random.PRNGKey(0)

    # --- Test 1: small FC, relu=True, single K step (no accumulator path) ---------------
    kx, kw, kb = jax.random.split(key, 3)
    B, F_in, F_out = 8, 32, 64
    x = jax.random.normal(kx, (B, F_in), dtype=jnp.float32)
    bound = 1.0 / jnp.sqrt(jnp.float32(F_in))            # mimic nn.Linear uniform init
    weight = jax.random.uniform(kw, (F_out, F_in), jnp.float32, -bound, bound)
    bias = jax.random.uniform(kb, (F_out,), jnp.float32, -bound, bound)

    params = prepare_fc_params(weight, bias)             # hoisted pad + transpose
    out = jax.block_until_ready(fc_forward(x, params, relu=True))
    ref = jnp.maximum(x @ weight.T + bias, 0.0)
    assert out.shape == (B, F_out)
    assert jnp.allclose(out, ref, atol=1e-5, rtol=1e-5), "mismatch (small, relu)"

    # --- Test 2: multi-tile grid (M/N/K all > 1 block), relu=False, f32 accumulator -----
    k2 = jax.random.PRNGKey(1)
    kx2, kw2, kb2 = jax.random.split(k2, 3)
    B2, Fi2, Fo2 = 16, 384, 256
    x2 = jax.random.normal(kx2, (B2, Fi2), dtype=jnp.float32)
    b2 = 1.0 / jnp.sqrt(jnp.float32(Fi2))
    w2 = jax.random.uniform(kw2, (Fo2, Fi2), jnp.float32, -b2, b2)
    bias2 = jax.random.uniform(kb2, (Fo2,), jnp.float32, -b2, b2)

    params2 = prepare_fc_params(w2, bias2, tk_max=128, tn_max=128)   # force small tiles
    out2 = jax.block_until_ready(fc_forward(x2, params2, relu=False, tm_max=8))
    ref2 = x2 @ w2.T + bias2
    assert out2.shape == (B2, Fo2)
    assert jnp.allclose(out2, ref2, atol=1e-4, rtol=1e-4), "mismatch (tiled accumulate)"

    # --- Test 2b: bf16 MXU path (f32 accumulation), looser tolerance --------------------
    out2b = jax.block_until_ready(
        fc_forward(x2, params2, relu=False, tm_max=8, use_bf16_mxu=True))
    assert jnp.allclose(out2b, ref2, atol=3e-2, rtol=3e-2), "mismatch (bf16 MXU path)"

    # --- Test 3: small-batch regime — N-axis split for 2 TCs + deeper weight buffering ---
    k3 = jax.random.PRNGKey(2)
    kx3, kw3, kb3 = jax.random.split(k3, 3)
    B3, Fi3, Fo3 = 4, 512, 256
    x3 = jax.random.normal(kx3, (B3, Fi3), dtype=jnp.float32)
    b3 = 1.0 / jnp.sqrt(jnp.float32(Fi3))
    w3 = jax.random.uniform(kw3, (Fo3, Fi3), jnp.float32, -b3, b3)
    bias3 = jax.random.uniform(kb3, (Fo3,), jnp.float32, -b3, b3)
    params3 = prepare_fc_params(w3, bias3, tk_max=128)
    try:
        out3 = jax.block_until_ready(fc_forward(x3, params3, relu=True,
                                                weight_buffer_count=3))
    except Exception:
        # Multi-buffered weight stream unsupported on this build: plain double-buffering.
        out3 = jax.block_until_ready(fc_forward(x3, params3, relu=True))
    ref3 = jnp.maximum(x3 @ w3.T + bias3, 0.0)
    assert out3.shape == (B3, Fo3)
    assert jnp.allclose(out3, ref3, atol=1e-4, rtol=1e-4), "mismatch (small-batch split)"

    print("KERNEL_OK")
</pallas_src>

<mosaic_0001>
module attributes {stable_mosaic.version = 11 : i64} {
  func.func @_fc_kernel_single(%arg0: i32, %arg1: i32, %arg2: i32, %arg3: memref<8x128xf32, #tpu.memory_space<vmem>>, %arg4: memref<128x128xf32, #tpu.memory_space<vmem>>, %arg5: memref<1x128xf32, #tpu.memory_space<vmem>>, %arg6: memref<8x128xf32, #tpu.memory_space<vmem>>) attributes {dimension_semantics = [#tpu.dimension_semantics<parallel>, #tpu.dimension_semantics<parallel>, #tpu.dimension_semantics<arbitrary>], iteration_bounds = array<i64: 1, 1, 1>, scalar_prefetch = 0 : i64, scratch_operands = 0 : i64, tpu.core_type = #tpu.core_type<tc>, window_params = [{transform_indices = @transform_0, window_bounds = array<i64: 8, 128>}, {transform_indices = @transform_1, window_bounds = array<i64: 128, 128>}, {transform_indices = @transform_2, window_bounds = array<i64: 1, 128>}, {transform_indices = @transform_3, window_bounds = array<i64: 8, 128>}]} {
    %c0 = arith.constant 0 : index
    %c0_0 = arith.constant 0 : index
    %0 = vector.load %arg3[%c0, %c0_0] : memref<8x128xf32, #tpu.memory_space<vmem>>, vector<8x128xf32>
    %c0_1 = arith.constant 0 : index
    %c0_2 = arith.constant 0 : index
    %1 = vector.load %arg4[%c0_1, %c0_2] : memref<128x128xf32, #tpu.memory_space<vmem>>, vector<128x128xf32>
    %cst = arith.constant dense<0.000000e+00> : vector<8x128xf32>
    %2 = tpu.matmul %0, %1, %cst {dimension_numbers = #tpu.dot_dimension_numbers<[1], [0], [0], [1], [0, 0, 1, 1], [], []>} : vector<8x128xf32>, vector<128x128xf32>, vector<8x128xf32> -> vector<8x128xf32>
    %c0_3 = arith.constant 0 : index
    %c0_4 = arith.constant 0 : index
    %3 = vector.load %arg5[%c0_3, %c0_4] : memref<1x128xf32, #tpu.memory_space<vmem>>, vector<1x128xf32>
    %4 = vector.broadcast %3 : vector<1x128xf32> to vector<8x128xf32>
    %5 = arith.addf %2, %4 : vector<8x128xf32>
    %cst_5 = arith.constant 0.000000e+00 : f32
    %6 = vector.broadcast %cst_5 : f32 to vector<8x128xf32>
    %7 = arith.maximumf %5, %6 : vector<8x128xf32>
    %c0_6 = arith.constant 0 : index
    %c0_7 = arith.constant 0 : index
    %8 = vector.load %arg6[%c0_6, %c0_7] : memref<8x128xf32, #tpu.memory_space<vmem>>, vector<8x128xf32>
    tpu.vector_store %arg6[%c0_6, %c0_7], %7 {strides = array<i32>} : memref<8x128xf32, #tpu.memory_space<vmem>>, vector<8x128xf32>,
    return
  }
  func.func @transform_0(%arg0: i32, %arg1: i32, %arg2: i32) -> (i32, i32) {
    %c0_i32 = arith.constant 0 : i32
    return %arg0, %arg2 : i32, i32
  }
  func.func @transform_1(%arg0: i32, %arg1: i32, %arg2: i32) -> (i32, i32) {
    %c0_i32 = arith.constant 0 : i32
    return %arg2, %arg1 : i32, i32
  }
  func.func @transform_2(%arg0: i32, %arg1: i32, %arg2: i32) -> (i32, i32) {
    %c0_i32 = arith.constant 0 : i32
    %c0_i32_0 = arith.constant 0 : i32
    return %c0_i32, %arg1 : i32, i32
  }
  func.func @transform_3(%arg0: i32, %arg1: i32, %arg2: i32) -> (i32, i32) {
    %c0_i32 = arith.constant 0 : i32
    return %arg0, %arg1 : i32, i32
  }
}

</mosaic_0001>

<bundles_post_ra>
// kernel: tpu_custom_call.1
= control target key start
LH: loop header
LB: loop body
LE: loop exit
PB: predicated region body
PF: predicated region fallthrough
CT: control target
= control target key end

     0   :  { %8 = vsyncpa [#allocation3], 0  ;;  %s384_s0 = inlined_call_operand.hbm [shape: f32[8,128], index: 0, kind: input, shape index: {}]   ;;  %s385_s1 = inlined_call_operand.hbm [shape: f32[128,128], index: 1, kind: input, shape index: {}]   ;;  %s386_s2 = inlined_call_operand.vmem [shape: f32[1,128], index: 2, kind: input, shape index: {}]   ;;  %s387_s3 = inlined_call_operand.hbm [shape: f32[8,128], index: 3, kind: output, shape index: {}]  }
   0x1   :  { %9 = vsyncpa [#allocation6], 0 }
   0x2   :  { %10 = vsyncpa [#allocation4], 0  ;;  %s310_s12 = smov [#allocation2]   ;;  %s311_s14 = smov [#allocation5]  }
   0x3   :  { %s17_s13 = sshll.u32 %s310_s12, 4  ;;  %s26_s15 = sshll.u32 %s311_s14, 4  ;;  %s18_s13 = int_to_ptr.vmem [resolvable:$true] %s17_s13  ;;  %s338_s15 = int_to_ptr.vmem [resolvable:$true] %s26_s15 }
   0x4   :  { %s238_s18 = scalar_lea.hbm %s384_s0, 128 }
   0x5   :  { %p239_p0 = scmp.ne.s32.totalorder %s384_s0, %s238_s18  ;;  %p242_p1 = scmp.lt.u32.totalorder %s238_s18, %s384_s0 }
   0x7   :  { %p244_p2 = pnand %p242_p1, %p239_p0 }
   0x9   :  { %247 = shalt.err (!%p244_p2)
}
   0xa   :  { %s248_s23 = scalar_lea.vmem %s18_s13, 128  ;;  %p253_p4 = scmp.lt.s32.totalorder %s18_s13, %s18_s13 }
   0xb   :  { %p249_p3 = scmp.ne.s32.totalorder %s18_s13, %s248_s23  ;;  %p254_p5 = scmp.lt.s32.totalorder %s248_s23, %s248_s23 }
   0xd   :  { %p255_p6 = por %p254_p5, %p253_p4 }
   0xf   :  { %p256_p7 = pnand %p255_p6, %p249_p3 }
  0x11   :  { %259 = shalt.err (!%p256_p7)
}
  0x12   :  { %20 = dma.hbm_to_vmem [thread:$0]  %s384_s0, 128, %s18_s13, [#allocation3]  }
  0x13   :  { %s260_s28 = scalar_lea.hbm %s385_s1, 2048 }
  0x14   :  { %p261_p8 = scmp.ne.s32.totalorder %s385_s1, %s260_s28  ;;  %p264_p9 = scmp.lt.u32.totalorder %s260_s28, %s385_s1 }
  0x16   :  { %p266_p10 = pnand %p264_p9, %p261_p8 }
  0x18   :  { %269 = shalt.err (!%p266_p10)
}
  0x19   :  { %s270_s6 = scalar_lea.vmem %s338_s15, 2048  ;;  %p275_p12 = scmp.lt.s32.totalorder %s338_s15, %s338_s15 }
  0x1a   :  { %p271_p11 = scmp.ne.s32.totalorder %s338_s15, %s270_s6  ;;  %p276_p13 = scmp.lt.s32.totalorder %s270_s6, %s270_s6 }
  0x1c   :  { %p277_p0 = por %p276_p13, %p275_p12 }
  0x1e   :  { %p278_p1 = pnand %p277_p0, %p271_p11 }
  0x20   :  { %281 = shalt.err (!%p278_p1)
}
  0x21   :  { %s312_s0 = smov 128   ;;  %s313_s7 = smov 8  }
  0x22   :  { %32 = dma.hbm_to_vmem [thread:$0]  %s385_s1, 2048, %s338_s15, [#allocation6], %s312_s0, %s312_s0, %s313_s7  }
  0x23   :  { %304 = dma.done.wait [#allocation3], 128  }
  0x24   :  { %305 = vsyncadd [#allocation3], 4294967168 }
  0x25   :  { %306 = dma.done.wait [#allocation6], 2048  }
  0x26   :  { %307 = vsyncadd [#allocation6], 4294965248  ;;  %v314_v0 = vmov 0.0|0.0   ;;  %vm315_vm0 = vmmov 0   ;;  %v316_v1 = vmov 0.0   ;;  %v42_v2 = vld [vmem:[#allocation5] sm:$0xff] }
  0x27   :  { %206 = vmatprep.subr.bf16.mxu0 %v314_v0  ;;  %203 = vmatprep.mubr.msk.f32.mxu0 %vm315_vm0, %v316_v1  ;;  %v43_v3 = vld [vmem:[#allocation5 + $0x8] sm:$0xff]  ;;  %v44_v4 = vld [vmem:[#allocation5 + $0x10] sm:$0xff]  ;;  %v45_v6 = vld [vmem:[#allocation5 + $0x18] sm:$0xff]  ;;  %s317_s11 = smov [#allocation7]  }
  0x28   :  { %v207_v5 = vpack.c.bf16 %v43_v3, %v42_v2  ;;  %v210_v7 = vpack.c.bf16 %v45_v6, %v44_v4  ;;  %v46_v8 = vld [vmem:[#allocation5 + $0x20] sm:$0xff]  ;;  %v47_v9 = vld [vmem:[#allocation5 + $0x28] sm:$0xff]  ;;  %v48_v11 = vld [vmem:[#allocation5 + $0x30] sm:$0xff]  ;;  %s143_s12 = sshll.u32 %s317_s11, 4  ;;  %s144_s12 = int_to_ptr.vmem [resolvable:$true] %s143_s12 }
  0x29   :  { %v213_v10 = vpack.c.bf16 %v47_v9, %v46_v8  ;;  %v49_v12 = vld [vmem:[#allocation5 + $0x38] sm:$0xff]  ;;  %v50_v14 = vld [vmem:[#allocation5 + $0x40] sm:$0xff]  ;;  %v51_v15 = vld [vmem:[#allocation5 + $0x48] sm:$0xff]  ;;  %s282_s13 = scalar_lea.vmem %s144_s12, 128  ;;  %p287_p3 = scmp.lt.s32.totalorder %s144_s12, %s144_s12 }
  0x2a   :  { %208 = vmatpush3.bf16.msra.mxu0 %v207_v5  ;;  %v216_v13 = vpack.c.bf16 %v49_v12, %v48_v11  ;;  %v219_v16 = vpack.c.bf16 %v51_v15, %v50_v14  ;;  %v52_v17 = vld [vmem:[#allocation5 + $0x50] sm:$0xff]  ;;  %v53_v18 = vld [vmem:[#allocation5 + $0x58] sm:$0xff]  ;;  %v54_v20 = vld [vmem:[#allocation5 + $0x60] sm:$0xff]  ;;  %p283_p2 = scmp.ne.s32.totalorder %s144_s12, %s282_s13  ;;  %p288_p4 = scmp.lt.s32.totalorder %s282_s13, %s282_s13 }
  0x2b   :  { %209 = vmatprep.subr.bf16.mxu0 %v314_v0  ;;  %v222_v19 = vpack.c.bf16 %v53_v18, %v52_v17  ;;  %v55_v21 = vld [vmem:[#allocation5 + $0x68] sm:$0xff]  ;;  %v56_v23 = vld [vmem:[#allocation5 + $0x70] sm:$0xff]  ;;  %v57_v24 = vld [vmem:[#allocation5 + $0x78] sm:$0xff] }
  0x2c   :  { %v225_v22 = vpack.c.bf16 %v55_v21, %v54_v20  ;;  %v228_v25 = vpack.c.bf16 %v57_v24, %v56_v23  ;;  %v41_v26 = vld [vmem:[#allocation2] sm:$0xff]  ;;  %p289_p5 = por %p288_p4, %p287_p3 }
  0x2d   :  { %v153_v27 = vld [vmem:[%s386_s2] ss:$0 sm:$0xff] }
  0x2e   :  { %211 = vmatpush3.bf16.msra.mxu0 %v210_v7  ;;  %p290_p6 = pnand %p289_p5, %p283_p2 }
  0x2f   :  { %212 = vmatprep.subr.bf16.mxu0 %v314_v0 }
  0x32   :  { %214 = vmatpush3.bf16.msra.mxu0 %v213_v10 }
  0x33   :  { %215 = vmatprep.subr.bf16.mxu0 %v314_v0 }
  0x36   :  { %217 = vmatpush3.bf16.msra.mxu0 %v216_v13 }
  0x37   :  { %218 = vmatprep.subr.bf16.mxu0 %v314_v0 }
  0x3a   :  { %220 = vmatpush3.bf16.msra.mxu0 %v219_v16 }
  0x3b   :  { %221 = vmatprep.subr.bf16.mxu0 %v314_v0 }
  0x3e   :  { %223 = vmatpush3.bf16.msra.mxu0 %v222_v19 }
  0x3f   :  { %224 = vmatprep.subr.bf16.mxu0 %v314_v0 }
  0x42   :  { %226 = vmatpush3.bf16.msra.mxu0 %v225_v22 }
  0x43   :  { %227 = vmatprep.subr.bf16.mxu0 %v314_v0 }
  0x46   :  { %229 = vmatpush3.bf16.msra.mxu0 %v228_v25 }
  0x49   :  { %204 = vmatmul.mubr.f32.vlgmr.msra.gmra.mrb[0].mxu0 %v41_v26 }
 0x11c   :  { %v131_v28 = vpop.f32.mrb[0].mxu0 }
 0x11d   :  { %v132_v29 = vadd.f32 %v153_v27, %v131_v28  ;;  %v205_v30 = vpop.f32.mrb[1].mxu0 }
 0x11f   :  { %v135_v31 = vmax.f32 %v132_v29, 0.0 }
 0x121   :  { %136 = vst [vmem:[#allocation7] sm:$0xff] %v135_v31 }
 0x122   :  { %293 = shalt.err (!%p290_p6)
}
 0x123   :  { %s294_s16 = scalar_lea.hbm %s387_s3, 128 }
 0x124   :  { %p295_p7 = scmp.ne.s32.totalorder %s387_s3, %s294_s16  ;;  %p298_p8 = scmp.lt.u32.totalorder %s294_s16, %s387_s3 }
 0x126   :  { %p300_p9 = pnand %p298_p8, %p295_p7 }
 0x128   :  { %303 = shalt.err (!%p300_p9)
}
 0x129   :  { %146 = dma.vmem_to_hbm [thread:$0]  %s144_s12, 128, %s387_s3, [#allocation4]  }
 0x12a   :  { %308 = dma.done.wait [#allocation4], 128  }
 0x12b   :  { %309 = vsyncadd [#allocation4], 4294967168 }
 0x12c   :  { %150 = vsyncpa [#allocation3], 1 }
 0x12d   :  { %151 = vsyncpa [#allocation6], 1 }
 0x12e   :  { %152 = vsyncpa [#allocation4], 1 }

</bundles_post_ra>
